<compile_context>
chip_gen: v6e
topology: v6e:2x2x1
jax: 0.10.0
libtpu: 0.0.40
codegen_flags: <defaults>
</compile_context>

<pallas_src>
import jax
import jax.numpy as jnp
from jax.experimental import pallas as pl
from jax.experimental.pallas import tpu as pltpu


# ---------------------------------------------------------------------------
# helpers
# ---------------------------------------------------------------------------
def _round_up(x, m):
    return ((x + m - 1) // m) * m


def _vmem_limit_bytes():
    # v5e/v6e have 128 MiB physical VMEM -> use a 96 MiB scoped limit and
    # larger row tiles; v7x has only 64 MiB -> keep a 48 MiB limit.
    cap = None
    try:
        info_fn = getattr(pltpu, "get_tpu_info", None)
        if info_fn is not None:
            cap = getattr(info_fn(), "vmem_capacity_bytes", None)
    except Exception:
        cap = None
    if cap is not None and cap >= 100 * 1024 * 1024:
        return 96 * 1024 * 1024
    return 48 * 1024 * 1024


def _choose_tile_m(n, cap_rows):
    # Cap so the grid has >= 2 steps when possible (keeps both v7x TensorCores
    # busy via dimension_semantics=("parallel",)); otherwise take the largest
    # sublane-aligned tile up to cap_rows (512 on v7x, 1024 on v5e/v6e).
    half = _round_up(max(1, -(-n // 2)), 8)
    return max(8, min(cap_rows, half))


def _choose_tq(s_pad):
    for t in (512, 256, 128):
        if s_pad % t == 0:
            return t
    return s_pad  # unreachable: s_pad is always a multiple of 128


# ---------------------------------------------------------------------------
# Kernel 1: fused encoder projection + merged target/relation linear + tag
# linear.  Row-tiled over (B*S_pad); weights are resident (constant block
# index, so Pallas does not re-DMA them across grid steps).
#   seq   = tanh(x @ W_enc + b_enc)                       (tile, E)
#   h_ur  = seq @ [W_r | W_u] + [b_r | b_u]               (tile, Hr+Ht)
#   h_r   = h_ur[:, :Hr]                   (bf16 out, prefix slice)
#   tag   = h_ur @ W_tag_ext + b_tag_pad   (W_tag_ext has zero rows for the
#                                           h_r columns -> equals h_t @ W_tag)
# The two small-N u/r matmuls of the reference are merged into a single
# lane-denser MXU matmul.
# NOTE(perf): tag output kept f32 (not bf16) to preserve viterbi argmax
# fidelity; the lane-pad to 128 columns over-writes ~12.8x bytes for
# tag_dim=10, acceptable versus the relation-score traffic.
# NOTE(perf): at production weight sizes consider
# pipeline_mode=pl.Buffered(1) on the constant-index weight specs to halve
# resident-weight VMEM on v7x (skipped here; weights are tiny at test scale).
# ---------------------------------------------------------------------------
def _proj_kernel(x_ref, wenc_ref, benc_ref, wur_ref, bur_ref,
                 wtag_ref, btag_ref, tag_ref, hr_ref):
    x = x_ref[...]                                                   # bf16
    seq = jnp.tanh(
        jnp.dot(x, wenc_ref[...], preferred_element_type=jnp.float32)
        + benc_ref[...])                                             # f32
    seq_b = seq.astype(jnp.bfloat16)
    h_ur = (jnp.dot(seq_b, wur_ref[...], preferred_element_type=jnp.float32)
            + bur_ref[...])                                          # f32
    h_ur_b = h_ur.astype(jnp.bfloat16)
    hr_ref[...] = h_ur_b[:, :hr_ref.shape[1]]                        # prefix
    tag_ref[...] = (jnp.dot(h_ur_b, wtag_ref[...],
                            preferred_element_type=jnp.float32)
                    + btag_ref[...])


def fused_projections(x, w_enc, b_enc, w_ur, b_ur, w_tag, b_tag, hr_dim,
                      vmem_limit):
    n, e = x.shape
    enc = w_enc.shape[1]
    ur = w_ur.shape[1]                       # Hr + Ht
    ht, tag_dim = w_tag.shape

    # Lane-dense tag output: pad the tag projection columns to a multiple of
    # 128 (sliced back in the wrapper; padded columns are exactly zero).
    tag_pad = _round_up(tag_dim, 128)
    # Extended tag weight: zero rows for the h_r columns of h_ur so that
    # h_ur @ W_tag_ext == h_t @ W_tag (single merged u/r matmul, no in-kernel
    # split needed on the tag path).
    w_tag_ext = jnp.zeros((ur, tag_pad), w_tag.dtype)
    w_tag_ext = w_tag_ext.at[hr_dim:hr_dim + ht, :tag_dim].set(w_tag)
    b_tag_p = jnp.zeros((1, tag_pad), b_tag.dtype).at[:, :tag_dim].set(b_tag)

    cap_rows = 1024 if vmem_limit >= 96 * 1024 * 1024 else 512
    tile_m = _choose_tile_m(n, cap_rows)
    n_pad = _round_up(n, tile_m)
    if n_pad != n:
        x = jnp.pad(x, ((0, n_pad - n), (0, 0)))
    grid = (n_pad // tile_m,)

    bf = jnp.bfloat16
    x_b = x.astype(bf)
    w_enc_b = w_enc.astype(bf)
    w_ur_b = w_ur.astype(bf)
    w_tag_b = w_tag_ext.astype(bf)

    def full2d(shape):
        return pl.BlockSpec(shape, lambda i: (0, 0))

    tag_p, h_r_out = pl.pallas_call(
        _proj_kernel,
        out_shape=(jax.ShapeDtypeStruct((n_pad, tag_pad), jnp.float32),
                   jax.ShapeDtypeStruct((n_pad, hr_dim), bf)),
        grid=grid,
        in_specs=[
            pl.BlockSpec((tile_m, e), lambda i: (i, 0)),   # activation tile
            full2d((e, enc)), full2d((1, enc)),            # resident weights
            full2d((enc, ur)), full2d((1, ur)),
            full2d((ur, tag_pad)), full2d((1, tag_pad)),
        ],
        out_specs=(pl.BlockSpec((tile_m, tag_pad), lambda i: (i, 0)),
                   pl.BlockSpec((tile_m, hr_dim), lambda i: (i, 0))),
        compiler_params=pltpu.CompilerParams(
            dimension_semantics=("parallel",),
            vmem_limit_bytes=vmem_limit),
    )(x_b, w_enc_b, b_enc, w_ur_b, b_ur, w_tag_b, b_tag_p)

    return tag_p[:n, :tag_dim], h_r_out[:n]


# ---------------------------------------------------------------------------
# Kernel 2: RelationAttention scores with the per-relation projection fused
# in (no q HBM round-trip, no XLA transpose of q).  Grid = (R, B, S_pad/TQ);
# keys are passed pre-transposed as (B, Hr, S_pad) once from the wrapper so no
# in-kernel XLU transpose is needed; scores are written in bf16 (halves the
# dominant HBM writeback) to a lane-dense (TQ, S_pad) block.
#   R[b, r, i, j] = sigmoid( (h_r[b, i] @ W_rel[r]) . h_r[b, j] + b_rel[r] )
# ---------------------------------------------------------------------------
def _rel_kernel(hq_ref, hkT_ref, wrel_ref, brel_ref, out_ref):
    r = pl.program_id(0)
    hq = hq_ref[0]                                  # (TQ, Hr)    bf16
    w = wrel_ref[0]                                 # (Hr, Hr)    bf16
    hk = hkT_ref[0]                                 # (Hr, S_pad) bf16
    q = jnp.dot(hq, w, preferred_element_type=jnp.float32).astype(jnp.bfloat16)
    s = jnp.dot(q, hk, preferred_element_type=jnp.float32)   # (TQ, S_pad)
    out_ref[0, 0] = jax.nn.sigmoid(s + brel_ref[r]).astype(out_ref.dtype)


def relation_attention(h_q, h_kT, w_rel, b_rel, vmem_limit):
    # h_q: (B, S_pad, Hr) bf16, h_kT: (B, Hr, S_pad) bf16,
    # w_rel: (R, Hr, Hr) bf16, b_rel: (R,) f32 (SMEM).
    B, S_pad, Hr = h_q.shape
    R = w_rel.shape[0]
    TQ = _choose_tq(S_pad)
    grid = (R, B, S_pad // TQ)
    return pl.pallas_call(
        _rel_kernel,
        out_shape=jax.ShapeDtypeStruct((B, R, S_pad, S_pad), jnp.bfloat16),
        grid=grid,
        in_specs=[
            pl.BlockSpec((1, TQ, Hr), lambda r, b, qi: (b, qi, 0)),
            pl.BlockSpec((1, Hr, S_pad), lambda r, b, qi: (b, 0, 0)),
            pl.BlockSpec((1, Hr, Hr), lambda r, b, qi: (r, 0, 0)),
            pl.BlockSpec(memory_space=pltpu.MemorySpace.SMEM),  # scalar biases
        ],
        out_specs=pl.BlockSpec((1, 1, TQ, S_pad), lambda r, b, qi: (b, r, qi, 0)),
        compiler_params=pltpu.CompilerParams(
            dimension_semantics=("parallel", "parallel", "parallel"),
            vmem_limit_bytes=vmem_limit),
    )(h_q, h_kT, w_rel, b_rel)


# ---------------------------------------------------------------------------
# CRF viterbi decode (plain JAX glue), mask-aware.
# TODO(synk): exact CRF START/STOP tag conventions of the reference CRF class
# are unspecified; a standard first-order viterbi over label_size+2 tags with a
# deterministic transition matrix is used.
# ---------------------------------------------------------------------------
def viterbi_decode(scores, mask, transitions):
    # scores: (B, S, T), mask: (B, S) in {0,1}, transitions: (T, T)
    B, S, T = scores.shape
    init = scores[:, 0, :]                                # (B, T)
    rest = jnp.swapaxes(scores[:, 1:, :], 0, 1)           # (S-1, B, T)
    mrest = jnp.swapaxes(mask[:, 1:], 0, 1).astype(bool)  # (S-1, B)

    def step(carry, xs):
        emit, m = xs
        cand = carry[:, :, None] + transitions[None, :, :] + emit[:, None, :]
        best = jnp.max(cand, axis=1)
        bp = jnp.argmax(cand, axis=1)
        keep = m[:, None]
        best = jnp.where(keep, best, carry)               # masked step: carry
        bp = jnp.where(keep, bp, jnp.arange(T, dtype=bp.dtype)[None, :])
        return best, bp

    best, bps = jax.lax.scan(step, init, (rest, mrest))
    last_tag = jnp.argmax(best, axis=-1)                  # (B,)

    def back(carry, bp):
        prev = jnp.take_along_axis(bp, carry[:, None], axis=1)[:, 0]
        return prev, prev

    _, prev_tags = jax.lax.scan(back, last_tag, bps[::-1])
    tags = jnp.concatenate([prev_tags[::-1], last_tag[None, :]], axis=0)  # (S,B)
    return tags.T.astype(jnp.int32)                       # (B, S)


# ---------------------------------------------------------------------------
# Parameters + forward wrapper.
# ---------------------------------------------------------------------------
def init_params(key, vocab_size, emb_dim, encoder_dim, target_hidden,
                relation_hidden, relation_num, label_size):
    ks = jax.random.split(key, 10)
    s = 0.1
    tag_dim = label_size + 2
    return dict(
        word_emb=s * jax.random.normal(ks[0], (vocab_size, emb_dim), jnp.float32),
        w_enc=s * jax.random.normal(ks[1], (emb_dim, encoder_dim), jnp.float32),
        b_enc=s * jax.random.normal(ks[2], (1, encoder_dim), jnp.float32),
        w_u=s * jax.random.normal(ks[3], (encoder_dim, target_hidden), jnp.float32),
        b_u=s * jax.random.normal(ks[4], (1, target_hidden), jnp.float32),
        w_r=s * jax.random.normal(ks[5], (encoder_dim, relation_hidden), jnp.float32),
        b_r=s * jax.random.normal(ks[6], (1, relation_hidden), jnp.float32),
        w_tag=s * jax.random.normal(ks[7], (target_hidden, tag_dim), jnp.float32),
        b_tag=s * jax.random.normal(ks[8], (1, tag_dim), jnp.float32),
        w_rel=s * jax.random.normal(ks[9], (relation_num, relation_hidden,
                                            relation_hidden), jnp.float32),
        b_rel=jnp.zeros((relation_num,), jnp.float32),
        transitions=s * jax.random.normal(jax.random.PRNGKey(123),
                                          (tag_dim, tag_dim), jnp.float32),
    )


def entity_relation_forward(params, all_input_ids, all_input_mask):
    B, S = all_input_ids.shape
    R, Hr, _ = params["w_rel"].shape
    vmem_limit = _vmem_limit_bytes()

    # Mandatory pad of the sequence length to a multiple of 128 so the
    # relation-score stores are lane-dense (unmasked vst).  Padded positions
    # carry mask=0 and are stripped from all outputs below.
    S_pad = _round_up(S, 128)
    if S_pad != S:
        ids = jnp.pad(all_input_ids, ((0, 0), (0, S_pad - S)))
        mask = jnp.pad(all_input_mask, ((0, 0), (0, S_pad - S)))
    else:
        ids, mask = all_input_ids, all_input_mask

    # WordEmbedding (word-id lookup) + mask (glue); dropout is identity at eval.
    emb = jnp.take(params["word_emb"], ids, axis=0)          # (B, S_pad, De)
    emb = emb * mask[..., None].astype(emb.dtype)

    # Fused encoder + merged u/r linear + tag linear (Pallas kernel 1).
    x = emb.reshape(B * S_pad, -1)
    w_ur = jnp.concatenate([params["w_r"], params["w_u"]], axis=1)
    b_ur = jnp.concatenate([params["b_r"], params["b_u"]], axis=1)
    tag_scores, h_r = fused_projections(
        x, params["w_enc"], params["b_enc"], w_ur, b_ur,
        params["w_tag"], params["b_tag"], Hr, vmem_limit)
    tag_scores = tag_scores.reshape(B, S_pad, -1)
    h_r3 = h_r.reshape(B, S_pad, Hr)
    # Keys transposed ONCE in the wrapper (instead of R in-kernel transposes).
    h_rT = jnp.transpose(h_r3, (0, 2, 1))                    # (B, Hr, S_pad)

    # RelationAttention (Pallas kernel 2) -> (B, R, S_pad, S_pad) bf16.
    # NOTE: like the PyTorch reference, relation scores at masked positions are
    # NOT suppressed (the reference applies no attention mask); padded
    # positions introduced above are stripped by the slice below.
    R_pad = relation_attention(h_r3, h_rT,
                               params["w_rel"].astype(jnp.bfloat16),
                               params["b_rel"], vmem_limit)
    R_tensor = R_pad[:, :, :S, :S]

    # CRF viterbi decode (glue, mask-aware), then strip the sequence pad.
    tag_seq = viterbi_decode(tag_scores, mask, params["transitions"])[:, :S]
    return tag_seq, R_tensor


if __name__ == "__main__":
    # Small, deterministic example shapes.
    B, S = 2, 8
    VOCAB, EMB_DIM = 50, 32
    ENCODER_DIM, TARGET_HIDDEN, RELATION_HIDDEN = 32, 32, 32
    RELATION_NUM, LABEL_SIZE = 4, 8

    key = jax.random.PRNGKey(0)
    pkey, ikey = jax.random.split(key)
    params = init_params(pkey, VOCAB, EMB_DIM, ENCODER_DIM, TARGET_HIDDEN,
                         RELATION_HIDDEN, RELATION_NUM, LABEL_SIZE)

    all_input_ids = jax.random.randint(ikey, (B, S), 0, VOCAB, dtype=jnp.int32)
    all_input_mask = jnp.ones((B, S), dtype=jnp.int32)

    tag_seq, R_tensor = jax.jit(entity_relation_forward)(
        params, all_input_ids, all_input_mask)
    jax.block_until_ready((tag_seq, R_tensor))

    assert tag_seq.shape == (B, S)
    assert R_tensor.shape == (B, RELATION_NUM, S, S)
    assert bool(jnp.all((R_tensor >= 0.0) & (R_tensor <= 1.0)))
    print("KERNEL_OK")
</pallas_src>

<mosaic_0001>
module attributes {stable_mosaic.version = 11 : i64} {
  func.func @_proj_kernel(%arg0: i32, %arg1: memref<128x32xbf16, #tpu.memory_space<vmem>>, %arg2: memref<32x32xbf16, #tpu.memory_space<vmem>>, %arg3: memref<1x32xf32, #tpu.memory_space<vmem>>, %arg4: memref<32x64xbf16, #tpu.memory_space<vmem>>, %arg5: memref<1x64xf32, #tpu.memory_space<vmem>>, %arg6: memref<64x128xbf16, #tpu.memory_space<vmem>>, %arg7: memref<1x128xf32, #tpu.memory_space<vmem>>, %arg8: memref<128x128xf32, #tpu.memory_space<vmem>>, %arg9: memref<128x32xbf16, #tpu.memory_space<vmem>>) attributes {dimension_semantics = [#tpu.dimension_semantics<parallel>], iteration_bounds = array<i64: 2>, scalar_prefetch = 0 : i64, scratch_operands = 0 : i64, tpu.core_type = #tpu.core_type<tc>, window_params = [{transform_indices = @transform_0, window_bounds = array<i64: 128, 32>}, {pipeline_mode = #tpu.pipeline_mode<synchronous>, transform_indices = @transform_1, window_bounds = array<i64: 32, 32>}, {pipeline_mode = #tpu.pipeline_mode<synchronous>, transform_indices = @transform_2, window_bounds = array<i64: 1, 32>}, {pipeline_mode = #tpu.pipeline_mode<synchronous>, transform_indices = @transform_3, window_bounds = array<i64: 32, 64>}, {pipeline_mode = #tpu.pipeline_mode<synchronous>, transform_indices = @transform_4, window_bounds = array<i64: 1, 64>}, {pipeline_mode = #tpu.pipeline_mode<synchronous>, transform_indices = @transform_5, window_bounds = array<i64: 64, 128>}, {pipeline_mode = #tpu.pipeline_mode<synchronous>, transform_indices = @transform_6, window_bounds = array<i64: 1, 128>}, {transform_indices = @transform_7, window_bounds = array<i64: 128, 128>}, {transform_indices = @transform_8, window_bounds = array<i64: 128, 32>}]} {
    %c0 = arith.constant 0 : index
    %c0_0 = arith.constant 0 : index
    %0 = vector.load %arg1[%c0, %c0_0] : memref<128x32xbf16, #tpu.memory_space<vmem>>, vector<128x32xbf16>
    %c0_1 = arith.constant 0 : index
    %c0_2 = arith.constant 0 : index
    %1 = vector.load %arg2[%c0_1, %c0_2] : memref<32x32xbf16, #tpu.memory_space<vmem>>, vector<32x32xbf16>
    %cst = arith.constant dense<0.000000e+00> : vector<128x32xf32>
    %2 = tpu.matmul %0, %1, %cst {dimension_numbers = #tpu.dot_dimension_numbers<[1], [0], [0], [1], [0, 0, 1, 1], [], []>} : vector<128x32xbf16>, vector<32x32xbf16>, vector<128x32xf32> -> vector<128x32xf32>
    %c0_3 = arith.constant 0 : index
    %c0_4 = arith.constant 0 : index
    %3 = vector.load %arg3[%c0_3, %c0_4] : memref<1x32xf32, #tpu.memory_space<vmem>>, vector<1x32xf32>
    %4 = vector.broadcast %3 : vector<1x32xf32> to vector<128x32xf32>
    %5 = arith.addf %2, %4 : vector<128x32xf32>
    %6 = math.tanh %5 : vector<128x32xf32>
    %7 = arith.truncf %6 : vector<128x32xf32> to vector<128x32xbf16>
    %c0_5 = arith.constant 0 : index
    %c0_6 = arith.constant 0 : index
    %8 = vector.load %arg4[%c0_5, %c0_6] : memref<32x64xbf16, #tpu.memory_space<vmem>>, vector<32x64xbf16>
    %cst_7 = arith.constant dense<0.000000e+00> : vector<128x64xf32>
    %9 = tpu.matmul %7, %8, %cst_7 {dimension_numbers = #tpu.dot_dimension_numbers<[1], [0], [0], [1], [0, 0, 1, 1], [], []>} : vector<128x32xbf16>, vector<32x64xbf16>, vector<128x64xf32> -> vector<128x64xf32>
    %c0_8 = arith.constant 0 : index
    %c0_9 = arith.constant 0 : index
    %10 = vector.load %arg5[%c0_8, %c0_9] : memref<1x64xf32, #tpu.memory_space<vmem>>, vector<1x64xf32>
    %11 = vector.broadcast %10 : vector<1x64xf32> to vector<128x64xf32>
    %12 = arith.addf %9, %11 : vector<128x64xf32>
    %13 = arith.truncf %12 : vector<128x64xf32> to vector<128x64xbf16>
    %14 = vector.extract_strided_slice %13 {offsets = [0, 0], sizes = [128, 32], strides = [1, 1]} : vector<128x64xbf16> to vector<128x32xbf16>
    %c0_10 = arith.constant 0 : index
    %c0_11 = arith.constant 0 : index
    %15 = vector.load %arg9[%c0_10, %c0_11] : memref<128x32xbf16, #tpu.memory_space<vmem>>, vector<128x32xbf16>
    tpu.vector_store %arg9[%c0_10, %c0_11], %14 {strides = array<i32>} : memref<128x32xbf16, #tpu.memory_space<vmem>>, vector<128x32xbf16>,
    %c0_12 = arith.constant 0 : index
    %c0_13 = arith.constant 0 : index
    %16 = vector.load %arg6[%c0_12, %c0_13] : memref<64x128xbf16, #tpu.memory_space<vmem>>, vector<64x128xbf16>
    %cst_14 = arith.constant dense<0.000000e+00> : vector<128x128xf32>
    %17 = tpu.matmul %13, %16, %cst_14 {dimension_numbers = #tpu.dot_dimension_numbers<[1], [0], [0], [1], [0, 0, 1, 1], [], []>} : vector<128x64xbf16>, vector<64x128xbf16>, vector<128x128xf32> -> vector<128x128xf32>
    %c0_15 = arith.constant 0 : index
    %c0_16 = arith.constant 0 : index
    %18 = vector.load %arg7[%c0_15, %c0_16] : memref<1x128xf32, #tpu.memory_space<vmem>>, vector<1x128xf32>
    %19 = vector.broadcast %18 : vector<1x128xf32> to vector<128x128xf32>
    %20 = arith.addf %17, %19 : vector<128x128xf32>
    %c0_17 = arith.constant 0 : index
    %c0_18 = arith.constant 0 : index
    %21 = vector.load %arg8[%c0_17, %c0_18] : memref<128x128xf32, #tpu.memory_space<vmem>>, vector<128x128xf32>
    tpu.vector_store %arg8[%c0_17, %c0_18], %20 {strides = array<i32>} : memref<128x128xf32, #tpu.memory_space<vmem>>, vector<128x128xf32>,
    return
  }
  func.func @transform_0(%arg0: i32) -> (i32, i32) {
    %c0_i32 = arith.constant 0 : i32
    %c0_i32_0 = arith.constant 0 : i32
    return %arg0, %c0_i32 : i32, i32
  }
  func.func @transform_1(%arg0: i32) -> (i32, i32) {
    %c0_i32 = arith.constant 0 : i32
    %c0_i32_0 = arith.constant 0 : i32
    %c0_i32_1 = arith.constant 0 : i32
    return %c0_i32, %c0_i32_0 : i32, i32
  }
  func.func @transform_2(%arg0: i32) -> (i32, i32) {
    %c0_i32 = arith.constant 0 : i32
    %c0_i32_0 = arith.constant 0 : i32
    %c0_i32_1 = arith.constant 0 : i32
    return %c0_i32, %c0_i32_0 : i32, i32
  }
  func.func @transform_3(%arg0: i32) -> (i32, i32) {
    %c0_i32 = arith.constant 0 : i32
    %c0_i32_0 = arith.constant 0 : i32
    %c0_i32_1 = arith.constant 0 : i32
    return %c0_i32, %c0_i32_0 : i32, i32
  }
  func.func @transform_4(%arg0: i32) -> (i32, i32) {
    %c0_i32 = arith.constant 0 : i32
    %c0_i32_0 = arith.constant 0 : i32
    %c0_i32_1 = arith.constant 0 : i32
    return %c0_i32, %c0_i32_0 : i32, i32
  }
  func.func @transform_5(%arg0: i32) -> (i32, i32) {
    %c0_i32 = arith.constant 0 : i32
    %c0_i32_0 = arith.constant 0 : i32
    %c0_i32_1 = arith.constant 0 : i32
    return %c0_i32, %c0_i32_0 : i32, i32
  }
  func.func @transform_6(%arg0: i32) -> (i32, i32) {
    %c0_i32 = arith.constant 0 : i32
    %c0_i32_0 = arith.constant 0 : i32
    %c0_i32_1 = arith.constant 0 : i32
    return %c0_i32, %c0_i32_0 : i32, i32
  }
  func.func @transform_7(%arg0: i32) -> (i32, i32) {
    %c0_i32 = arith.constant 0 : i32
    %c0_i32_0 = arith.constant 0 : i32
    return %arg0, %c0_i32 : i32, i32
  }
  func.func @transform_8(%arg0: i32) -> (i32, i32) {
    %c0_i32 = arith.constant 0 : i32
    %c0_i32_0 = arith.constant 0 : i32
    return %arg0, %c0_i32 : i32, i32
  }
}

module attributes {stable_mosaic.version = 11 : i64} {
  func.func @_rel_kernel(%arg0: i32, %arg1: i32, %arg2: i32, %arg3: memref<1x128x32xbf16, #tpu.memory_space<vmem>>, %arg4: memref<1x32x128xbf16, #tpu.memory_space<vmem>>, %arg5: memref<1x32x32xbf16, #tpu.memory_space<vmem>>, %arg6: memref<4xf32, #tpu.memory_space<smem>>, %arg7: memref<1x1x128x128xbf16, #tpu.memory_space<vmem>>) attributes {dimension_semantics = [#tpu.dimension_semantics<parallel>, #tpu.dimension_semantics<parallel>, #tpu.dimension_semantics<parallel>], iteration_bounds = array<i64: 4, 2, 1>, scalar_prefetch = 0 : i64, scratch_operands = 0 : i64, tpu.core_type = #tpu.core_type<tc>, window_params = [{transform_indices = @transform_0, window_bounds = array<i64: 1, 128, 32>}, {transform_indices = @transform_1, window_bounds = array<i64: 1, 32, 128>}, {transform_indices = @transform_2, window_bounds = array<i64: 1, 32, 32>}, {transform_indices = @transform_3, window_bounds = array<i64: 4>}, {transform_indices = @transform_4, window_bounds = array<i64: 1, 1, 128, 128>}]} {
    %c0 = arith.constant 0 : index
    %c0_0 = arith.constant 0 : index
    %c0_1 = arith.constant 0 : index
    %0 = vector.load %arg3[%c0, %c0_0, %c0_1] : memref<1x128x32xbf16, #tpu.memory_space<vmem>>, vector<1x128x32xbf16>
    %1 = vector.shape_cast %0 : vector<1x128x32xbf16> to vector<128x32xbf16>
    %c0_2 = arith.constant 0 : index
    %c0_3 = arith.constant 0 : index
    %c0_4 = arith.constant 0 : index
    %2 = vector.load %arg5[%c0_2, %c0_3, %c0_4] : memref<1x32x32xbf16, #tpu.memory_space<vmem>>, vector<1x32x32xbf16>
    %3 = vector.shape_cast %2 : vector<1x32x32xbf16> to vector<32x32xbf16>
    %c0_5 = arith.constant 0 : index
    %c0_6 = arith.constant 0 : index
    %c0_7 = arith.constant 0 : index
    %4 = vector.load %arg4[%c0_5, %c0_6, %c0_7] : memref<1x32x128xbf16, #tpu.memory_space<vmem>>, vector<1x32x128xbf16>
    %5 = vector.shape_cast %4 : vector<1x32x128xbf16> to vector<32x128xbf16>
    %cst = arith.constant dense<0.000000e+00> : vector<128x32xf32>
    %6 = tpu.matmul %1, %3, %cst {dimension_numbers = #tpu.dot_dimension_numbers<[1], [0], [0], [1], [0, 0, 1, 1], [], []>} : vector<128x32xbf16>, vector<32x32xbf16>, vector<128x32xf32> -> vector<128x32xf32>
    %7 = arith.truncf %6 : vector<128x32xf32> to vector<128x32xbf16>
    %cst_8 = arith.constant dense<0.000000e+00> : vector<128x128xf32>
    %8 = tpu.matmul %7, %5, %cst_8 {dimension_numbers = #tpu.dot_dimension_numbers<[1], [0], [0], [1], [0, 0, 1, 1], [], []>} : vector<128x32xbf16>, vector<32x128xbf16>, vector<128x128xf32> -> vector<128x128xf32>
    %9 = arith.index_cast %arg0 : i32 to index
    %10 = memref.load %arg6[%9] : memref<4xf32, #tpu.memory_space<smem>>
    %11 = vector.broadcast %10 : f32 to vector<128x128xf32>
    %12 = arith.addf %8, %11 : vector<128x128xf32>
    %13 = arith.negf %12 : vector<128x128xf32>
    %14 = math.exp %13 : vector<128x128xf32>
    %cst_9 = arith.constant 1.000000e+00 : f32
    %15 = vector.broadcast %cst_9 : f32 to vector<128x128xf32>
    %16 = arith.addf %15, %14 : vector<128x128xf32>
    %17 = arith.divf %15, %16 : vector<128x128xf32>
    %18 = arith.truncf %17 : vector<128x128xf32> to vector<128x128xbf16>
    %c0_10 = arith.constant 0 : index
    %c0_11 = arith.constant 0 : index
    %c0_12 = arith.constant 0 : index
    %c0_13 = arith.constant 0 : index
    %19 = vector.load %arg7[%c0_10, %c0_11, %c0_12, %c0_13] : memref<1x1x128x128xbf16, #tpu.memory_space<vmem>>, vector<1x1x128x128xbf16>
    %20 = vector.shape_cast %19 : vector<1x1x128x128xbf16> to vector<128x128xbf16>
    %21 = vector.shape_cast %18 : vector<128x128xbf16> to vector<1x1x128x128xbf16>
    tpu.vector_store %arg7[%c0_10, %c0_11, %c0_12, %c0_13], %21 {strides = array<i32>} : memref<1x1x128x128xbf16, #tpu.memory_space<vmem>>, vector<1x1x128x128xbf16>,
    return
  }
  func.func @transform_0(%arg0: i32, %arg1: i32, %arg2: i32) -> (i32, i32, i32) {
    %c0_i32 = arith.constant 0 : i32
    %c0_i32_0 = arith.constant 0 : i32
    return %arg1, %arg2, %c0_i32 : i32, i32, i32
  }
  func.func @transform_1(%arg0: i32, %arg1: i32, %arg2: i32) -> (i32, i32, i32) {
    %c0_i32 = arith.constant 0 : i32
    %c0_i32_0 = arith.constant 0 : i32
    %c0_i32_1 = arith.constant 0 : i32
    return %arg1, %c0_i32, %c0_i32_0 : i32, i32, i32
  }
  func.func @transform_2(%arg0: i32, %arg1: i32, %arg2: i32) -> (i32, i32, i32) {
    %c0_i32 = arith.constant 0 : i32
    %c0_i32_0 = arith.constant 0 : i32
    %c0_i32_1 = arith.constant 0 : i32
    return %arg0, %c0_i32, %c0_i32_0 : i32, i32, i32
  }
  func.func @transform_3(%arg0: i32, %arg1: i32, %arg2: i32) -> i32 {
    %c0_i32 = arith.constant 0 : i32
    %c0_i32_0 = arith.constant 0 : i32
    return %c0_i32 : i32
  }
  func.func @transform_4(%arg0: i32, %arg1: i32, %arg2: i32) -> (i32, i32, i32, i32) {
    %c0_i32 = arith.constant 0 : i32
    %c0_i32_0 = arith.constant 0 : i32
    return %arg1, %arg0, %arg2, %c0_i32 : i32, i32, i32, i32
  }
}

</mosaic_0001>

<bundles_post_ra>
// kernel: custom-call.4
= control target key start
LH: loop header
LB: loop body
LE: loop exit
PB: predicated region body
PF: predicated region fallthrough
CT: control target
= control target key end

     0   :  { %s6_s0 = inlined_call_operand.vmem [shape: s32[127,2,10], index: 0, kind: output, shape index: {}]  }

// kernel: custom-call.5
= control target key start
LH: loop header
LB: loop body
LE: loop exit
PB: predicated region body
PF: predicated region fallthrough
CT: control target
= control target key end

     0   :  { %s6_s0 = inlined_call_operand.vmem [shape: s32[127,2], index: 0, kind: output, shape index: {}]  }

// kernel: entity_relation_forward.2
= control target key start
LH: loop header
LB: loop body
LE: loop exit
PB: predicated region body
PF: predicated region fallthrough
CT: control target
= control target key end

     0   :  { %s1338_s27 = smov 0   ;;  %s1493_s0 = inlined_call_operand.vmem [shape: bf16[256,32], index: 0, kind: input, shape index: {}]   ;;  %s1494_s1 = inlined_call_operand.vmem [shape: bf16[32,32], index: 1, kind: input, shape index: {}]   ;;  %s1495_s2 = inlined_call_operand.vmem [shape: f32[1,32], index: 2, kind: input, shape index: {}]   ;;  %s1496_s3 = inlined_call_operand.vmem [shape: bf16[32,64], index: 3, kind: input, shape index: {}]   ;;  %s1497_s4 = inlined_call_operand.vmem [shape: f32[1,64], index: 4, kind: input, shape index: {}]   ;;  %s1498_s5 = inlined_call_operand.vmem [shape: bf16[64,128], index: 5, kind: input, shape index: {}]   ;;  %s1499_s6 = inlined_call_operand.vmem [shape: f32[1,128], index: 6, kind: input, shape index: {}]   ;;  %s1500_s7 = inlined_call_operand.vmem [shape: f32[256,128], index: 7, kind: output, shape index: {0}]   ;;  %s1501_s8 = inlined_call_operand.vmem [shape: bf16[256,32], index: 8, kind: output, shape index: {1}]  }
   0x1 LB: > { %s1041_s28 = sadd.s32 4294967295, %s1291_s27   ;;  %p1045_p0 = scmp.ge.s32.totalorder %s1291_s27, 1  ;;  %s1291_s27 = sphi %s1338_s27, %s19_s27  }
   0x2   : > { %p266_p1 = scmp.lt.s32.totalorder %s1291_s27, 3 }
   0x4   : > { %p267_p2 = pnand %p1045_p0, %p266_p1 }
   0x5   : > { %s1046_s9 = sshll.u32 (!%p267_p2), %s1041_s28, 4 }
   0x6   : > { %270 = sbr.rel (%p267_p2) target bundleno = 668 (0x29c), region = 48  ;;  %p306_p3 = scmp.lt.s32.totalorder (!%p267_p2), %s1046_s9, 31 }
   0xb   : > { %v1237_v0 = vld [vmem:[%s1494_s1 + $0x8] sm:$0xff]   ;;  %v1238_v1 = vld [vmem:[%s1494_s1] sm:$0xff]   ;;  %s1503_s9 = smov (!%p306_p3, %s1046_s9), 31  ;;  %vm403_vm0 = vcmask 261120   ;;  %v1249_v12 = vld [vmem:[%s1498_s5 + $0x18] sm:$0xff]   ;;  %vm757_vm1 = vcmask 257024  }
   0xc   : > { %1161 = vmatprep.subr.bf16.mxu0 %v1237_v0  ;;  %1225 = vmatprep.subr.bf16.mxu1 %v1237_v0  ;;  %s1047_s12 = sshll.u32 %s1503_s9, 2  ;;  %v1247_v10 = vld [vmem:[%s1496_s3 + $0x8] sm:$0xff]   ;;  %v1248_v11 = vld [vmem:[%s1496_s3] sm:$0xff]   ;;  %v1250_v13 = vld [vmem:[%s1498_s5 + $0x10] sm:$0xff]   ;;  %vm813_vm2 = vcmask 523264  }
   0xd   : > { %1162 = vmatpush3.bf16.msra.mxu0 %v1237_v0  ;;  %1227 = vmatpush3.bf16.msra.mxu1 %v1237_v0  ;;  %s309_s15 = scalar_lea.vmem %s1493_s0, %s1047_s12  ;;  %v1052_v15 = vld [vmem:[%s1495_s2] ss:$0 sm:$0xff] }
   0xe   : > { %1163 = vmatprep.subr.bf16.mxu0 %v1238_v1  ;;  %1226 = vmatprep.subr.bf16.mxu1 %v1238_v1  ;;  %v1239_v2 = vld [vmem:[%s309_s15] sm:$0xff]   ;;  %v1240_v3 = vld [vmem:[%s309_s15 + $0x8] sm:$0xff]   ;;  %v1241_v4 = vld [vmem:[%s309_s15 + $0x10] sm:$0xff]  }
   0xf   : > { %1165 = vmatprep.mubr.msk.bf16.mxu0 %vm403_vm0, %v1239_v2  ;;  %v1243_v5 = vld [vmem:[%s309_s15 + $0x20] sm:$0xff]   ;;  %v1244_v6 = vld [vmem:[%s309_s15 + $0x28] sm:$0xff]   ;;  %v1245_v7 = vld [vmem:[%s309_s15 + $0x30] sm:$0xff]  }
  0x10   : > { %1173 = vmatprep.mubr.msk.bf16.mxu1 %vm403_vm0, %v1243_v5  ;;  %v1242_v8 = vld [vmem:[%s309_s15 + $0x18] sm:$0xff]  }
  0x11   : > { %1164 = vmatpush3.bf16.msra.mxu0 %v1238_v1  ;;  %1228 = vmatpush3.bf16.msra.mxu1 %v1238_v1  ;;  %v1246_v9 = vld [vmem:[%s309_s15 + $0x38] sm:$0xff]   ;;  %s1408_s15 = scalar_lea.vmem %s1501_s8, %s1047_s12  ;;  %s1049_s12 = sshll.u32 %s1503_s9, 3 }
  0x12   : > { %1181 = vmatprep.subr.bf16.mxu1 %v1247_v10  ;;  %1201 = vmatprep.subr.bf16.mxu0 %v1249_v12  ;;  %s1472_s20 = scalar_lea.vmem %s1500_s7, %s1049_s12 }
  0x14   : > { %1166 = vmatmul.mubr.msk.bf16.vlgmr.msra.gmra.mxu0 %vm403_vm0, %v1240_v3  ;;  %1174 = vmatmul.mubr.msk.bf16.vlgmr.msra.gmra.mxu1 %vm403_vm0, %v1244_v6 }
  0x15   : > { %1169 = vmatprep.mubr.msk.bf16.mxu0 %vm403_vm0, %v1241_v4  ;;  %1177 = vmatprep.mubr.msk.bf16.mxu1 %vm403_vm0, %v1245_v7  ;;  %v1251_v7 = vld [vmem:[%s1498_s5 + $0x8] sm:$0xff]  }
  0x16   : > { %1182 = vmatpush3.bf16.msra.mxu1 %v1247_v10  ;;  %1202 = vmatpush3.bf16.msra.mxu0 %v1249_v12 }
  0x17   : > { %1183 = vmatprep.subr.bf16.mxu1 %v1248_v11  ;;  %1203 = vmatprep.subr.bf16.mxu0 %v1250_v13 }
  0x1a   : > { %1184 = vmatpush3.bf16.msra.mxu1 %v1248_v11  ;;  %1204 = vmatpush3.bf16.msra.mxu0 %v1250_v13 }
  0x1b   : > { %1205 = vmatprep.subr.bf16.mxu0 %v1251_v7 }
  0x1c   : > { %1170 = vmatmul.mubr.msk.bf16.gmra.mxu0 %vm403_vm0, %v1242_v8  ;;  %1178 = vmatmul.mubr.msk.bf16.gmra.mxu1 %vm403_vm0, %v1246_v9  ;;  %v1252_v8 = vld [vmem:[%s1498_s5] sm:$0xff]  }
  0x1d   : > { %v1400_v9 = vld [vmem:[%s1497_s4] ss:$0 sm:$0xff] }
  0x1e   : > { %1206 = vmatpush3.bf16.msra.mxu0 %v1251_v7 }
  0x1f   : > { %1207 = vmatprep.subr.bf16.mxu0 %v1252_v8 }
  0x22   : > { %1208 = vmatpush3.bf16.msra.mxu0 %v1252_v8 }
  0xd4   : > { %v1167_v14 = vpop.f32.mrf.mxu0  ;;  %v1175_v19 = vpop.f32.mrf.mxu1 }
  0xd5   : > { %v471_v21 = vadd.f32 %v1167_v14, %v1052_v15  ;;  %v503_v40 = vadd.f32 %v1175_v19, %v1052_v15 }
  0xd6   : > { %v462_v16 = vpop.f32.mrf.mxu0  ;;  %v494_v23 = vpop.f32.mrf.mxu1 }
  0xd7   : > { %v463_v17 = vadd.f32 %v1052_v15, %v462_v16  ;;  %v495_v27 = vadd.f32 %v1052_v15, %v494_v23 }
  0xd8   : > { %v1168_v18 = vpop.f32.mrf.mxu0  ;;  %v1176_v26 = vpop.f32.mrf.mxu1 }
  0xd9   : > { %v474_v20 = vadd.f32 %v1168_v18, %v1052_v15  ;;  %1253 = vtanh.f32 %v463_v17  ;;  %v506_v45 = vadd.f32 %v1176_v26, %v1052_v15 }
  0xda   : > { %v465_v22 = vpop.f32.mrf.mxu0  ;;  %v497_v29 = vpop.f32.mrf.mxu1 }
  0xdb   : > { %v466_v24 = vadd.f32 %v1052_v15, %v465_v22  ;;  %1255 = vtanh.f32 %v474_v20  ;;  %v498_v31 = vadd.f32 %v1052_v15, %v497_v29 }
  0xdc   : > { %v1171_v25 = vpop.f32.mrf.mxu0  ;;  %v1179_v33 = vpop.f32.mrf.mxu1 }
  0xdd   : > { %1257 = vtanh.f32 %v466_v24  ;;  %v487_v35 = vadd.f32 %v1171_v25, %v1052_v15  ;;  %v519_v53 = vadd.f32 %v1179_v33, %v1052_v15 }
  0xde   : > { %1259 = vtanh.f32 %v471_v21  ;;  %v478_v28 = vpop.f32.mrf.mxu0  ;;  %v510_v37 = vpop.f32.mrf.mxu1 }
  0xdf   : > { %v479_v30 = vadd.f32 %v1052_v15, %v478_v28  ;;  %1261 = vtanh.f32 %v495_v27  ;;  %v511_v41 = vadd.f32 %v1052_v15, %v510_v37 }
  0xe0   : > { %v1172_v32 = vpop.f32.mrf.mxu0  ;;  %v1180_v39 = vpop.f32.mrf.mxu1 }
  0xe1   : > { %v490_v34 = vadd.f32 %v1172_v32, %v1052_v15  ;;  %1263 = vtanh.f32 %v479_v30  ;;  %v522_v55 = vadd.f32 %v1180_v39, %v1052_v15 }
  0xe2   : > { %v481_v36 = vpop.f32.mrf.mxu0  ;;  %1265 = vtanh.f32 %v498_v31  ;;  %v513_v42 = vpop.f32.mrf.mxu1 }
  0xe3   : > { %v482_v38 = vadd.f32 %v1052_v15, %v481_v36  ;;  %1267 = vtanh.f32 %v490_v34  ;;  %v514_v43 = vadd.f32 %v1052_v15, %v513_v42 }
  0xe5   : > { %1269 = vtanh.f32 %v482_v38 }
  0xe6   : > { %1271 = vtanh.f32 %v487_v35  ;;  %v1254_v44 = vpop.eup %1253 }
  0xe7   : > { %1273 = vtanh.f32 %v503_v40 }
  0xe8   : > { %v1256_v46 = vpop.eup %1255  ;;  %1275 = vtanh.f32 %v511_v41 }
  0xe9   : > { %1277 = vtanh.f32 %v514_v43 }
  0xea   : > { %v1258_v47 = vpop.eup %1257  ;;  %1279 = vtanh.f32 %v506_v45 }
  0xeb   : > { %v1260_v48 = vpop.eup %1259  ;;  %v541_v49 = vpack.c.bf16 %v1258_v47, %v1254_v44  ;;  %1281 = vtanh.f32 %v519_v53 }
  0xec   : > { %v542_v50 = vpack.c.bf16 %v1256_v46, %v1260_v48  ;;  %v1262_v51 = vpop.eup %1261  ;;  %1283 = vtanh.f32 %v522_v55 }
  0xed   : > { %1185 = vmatprep.mubr.msk.bf16.mxu1 %vm403_vm0, %v541_v49 }
  0xee   : > { %1186 = vmatmul.mubr.msk.bf16.vlgmr.msra.gmra.mxu1 %vm403_vm0, %v542_v50  ;;  %v1264_v52 = vpop.eup %1263 }
  0xef   : > { %v1266_v54 = vpop.eup %1265 }
  0xf0   : > { %v1268_v56 = vpop.eup %1267  ;;  %v545_v60 = vpack.c.bf16 %v1266_v54, %v1262_v51 }
  0xf2   : > { %v1270_v57 = vpop.eup %1269 }
  0xf3   : > { %v1272_v58 = vpop.eup %1271  ;;  %v543_v59 = vpack.c.bf16 %v1270_v57, %v1264_v52 }
  0xf4   : > { %v544_v61 = vpack.c.bf16 %v1268_v56, %v1272_v58  ;;  %v1274_v62 = vpop.eup %1273 }
  0xf5   : > { %1189 = vmatprep.mubr.msk.bf16.mxu1 %vm403_vm0, %v543_v59  ;;  %v1276_v63 = vpop.eup %1275 }
  0xf6   : > { %1190 = vmatmul.mubr.msk.bf16.gmra.mxu1 %vm403_vm0, %v544_v61  ;;  %v1278_v0 = vpop.eup %1277 }
  0xf7   : > { %1193 = vmatprep.mubr.msk.bf16.mxu1 %vm403_vm0, %v545_v60  ;;  %v1280_v1 = vpop.eup %1279  ;;  %v547_v2 = vpack.c.bf16 %v1278_v0, %v1276_v63 }
  0xf8   : > { %v546_v3 = vpack.c.bf16 %v1280_v1, %v1274_v62  ;;  %v1282_v4 = vpop.eup %1281 }
  0xf9   : > { %v1284_v5 = vpop.eup %1283 }
  0xfa   : > { %v548_v6 = vpack.c.bf16 %v1284_v5, %v1282_v4 }
  0xfe   : > { %1194 = vmatmul.mubr.msk.bf16.gmra.mxu1 %vm403_vm0, %v546_v3 }
  0xff   : > { %1197 = vmatprep.mubr.msk.bf16.mxu1 %vm403_vm0, %v547_v2  ;;  %v1098_v2 = vld [vmem:[%s1499_s6] ss:$0 sm:$0xff] }
 0x106   : > { %1198 = vmatmul.mubr.msk.bf16.gmra.mxu1 %vm403_vm0, %v548_v6 }
 0x1ae   : > { %v1187_v10 = vpop.f32.mrf.mxu1 }
 0x1af   : > { %v639_v11 = vadd.f32 %v1187_v10, %v1400_v9 }
 0x1b0   : > { %v630_v12 = vpop.f32.mrf.mxu1 }
 0x1b1   : > { %v1115_v13 = vpack.c.bf16 %v639_v11, %v639_v11  ;;  %v631_v14 = vadd.f32 %v1400_v9, %v630_v12 }
 0x1b2   : > { %v1188_v15 = vpop.f32.mrf.mxu1 }
 0x1b3   : > { %760 = vst.msk [vmem:[%s1408_s15 + $0x8] sm:$0xf] %vm757_vm1, %v1115_v13  ;;  %v1113_v16 = vpack.c.bf16 %v631_v14, %v631_v14  ;;  %v642_v17 = vadd.f32 %v1188_v15, %v1400_v9 }
 0x1b4   : > { %v633_v18 = vpop.f32.mrf.mxu1 }
 0x1b5   : > { %758 = vst.msk [vmem:[%s1408_s15] sm:$0xf] %vm757_vm1, %v1113_v16  ;;  %v1116_v19 = vpack.c.bf16 %v642_v17, %v642_v17  ;;  %v634_v20 = vadd.f32 %v1400_v9, %v633_v18  ;;  %v694_v25 = vpack.c.bf16 %v642_v17, %v639_v11 }
 0x1b6   : > { %v1191_v21 = vpop.f32.mrf.mxu1 }
 0x1b7   : > { %761 = vst.msk [vmem:[%s1408_s15 + $0xc] sm:$0xf] %vm757_vm1, %v1116_v19  ;;  %v693_v22 = vpack.c.bf16 %v634_v20, %v631_v14  ;;  %v1114_v23 = vpack.c.bf16 %v634_v20, %v634_v20  ;;  %v655_v24 = vadd.f32 %v1191_v21, %v1400_v9 }
 0x1b8   : > { %v646_v26 = vpop.f32.mrf.mxu1 }
 0x1b9   : > { %759 = vst.msk [vmem:[%s1408_s15 + $0x4] sm:$0xf] %vm757_vm1, %v1114_v23  ;;  %v1119_v27 = vpack.c.bf16 %v655_v24, %v655_v24  ;;  %v647_v28 = vadd.f32 %v1400_v9, %v646_v26  ;;  %1209 = vmatprep.mubr.msk.bf16.mxu0 %vm813_vm2, %v693_v22 }
 0x1ba   : > { %v1192_v29 = vpop.f32.mrf.mxu1  ;;  %1210 = vmatmul.mubr.msk.bf16.vlgmr.msra.gmra.mxu0 %vm813_vm2, %v694_v25 }
 0x1bb   : > { %764 = vst.msk [vmem:[%s1408_s15 + $0x18] sm:$0xf] %vm757_vm1, %v1119_v27  ;;  %v1117_v30 = vpack.c.bf16 %v647_v28, %v647_v28  ;;  %v658_v31 = vadd.f32 %v1192_v29, %v1400_v9 }
 0x1bc   : > { %v649_v32 = vpop.f32.mrf.mxu1 }
 0x1bd   : > { %762 = vst.msk [vmem:[%s1408_s15 + $0x10] sm:$0xf] %vm757_vm1, %v1117_v30  ;;  %v1120_v33 = vpack.c.bf16 %v658_v31, %v658_v31  ;;  %v650_v34 = vadd.f32 %v1400_v9, %v649_v32  ;;  %v696_v39 = vpack.c.bf16 %v658_v31, %v655_v24 }
 0x1be   : > { %v1195_v35 = vpop.f32.mrf.mxu1 }
 0x1bf   : > { %765 = vst.msk [vmem:[%s1408_s15 + $0x1c] sm:$0xf] %vm757_vm1, %v1120_v33  ;;  %v695_v36 = vpack.c.bf16 %v650_v34, %v647_v28  ;;  %v1118_v37 = vpack.c.bf16 %v650_v34, %v650_v34  ;;  %v671_v38 = vadd.f32 %v1195_v35, %v1400_v9 }
 0x1c0   : > { %v662_v40 = vpop.f32.mrf.mxu1 }
 0x1c1   : > { %763 = vst.msk [vmem:[%s1408_s15 + $0x14] sm:$0xf] %vm757_vm1, %v1118_v37  ;;  %v1123_v41 = vpack.c.bf16 %v671_v38, %v671_v38  ;;  %v663_v42 = vadd.f32 %v1400_v9, %v662_v40  ;;  %1213 = vmatprep.mubr.msk.bf16.mxu0 %vm813_vm2, %v695_v36 }
 0x1c2   : > { %v1196_v43 = vpop.f32.mrf.mxu1  ;;  %1214 = vmatmul.mubr.msk.bf16.gmra.mxu0 %vm813_vm2, %v696_v39 }
 0x1c3   : > { %768 = vst.msk [vmem:[%s1408_s15 + $0x28] sm:$0xf] %vm757_vm1, %v1123_v41  ;;  %v1121_v44 = vpack.c.bf16 %v663_v42, %v663_v42  ;;  %v674_v45 = vadd.f32 %v1196_v43, %v1400_v9 }
 0x1c4   : > { %v665_v46 = vpop.f32.mrf.mxu1 }
 0x1c5   : > { %766 = vst.msk [vmem:[%s1408_s15 + $0x20] sm:$0xf] %vm757_vm1, %v1121_v44  ;;  %v1124_v47 = vpack.c.bf16 %v674_v45, %v674_v45  ;;  %v666_v48 = vadd.f32 %v1400_v9, %v665_v46  ;;  %v698_v53 = vpack.c.bf16 %v674_v45, %v671_v38 }
 0x1c6   : > { %v1199_v49 = vpop.f32.mrf.mxu1 }
 0x1c7   : > { %769 = vst.msk [vmem:[%s1408_s15 + $0x2c] sm:$0xf] %vm757_vm1, %v1124_v47  ;;  %v697_v50 = vpack.c.bf16 %v666_v48, %v663_v42  ;;  %v1122_v51 = vpack.c.bf16 %v666_v48, %v666_v48  ;;  %v687_v52 = vadd.f32 %v1199_v49, %v1400_v9 }
 0x1c8   : > { %v678_v54 = vpop.f32.mrf.mxu1 }
 0x1c9   : > { %767 = vst.msk [vmem:[%s1408_s15 + $0x24] sm:$0xf] %vm757_vm1, %v1122_v51  ;;  %v1127_v55 = vpack.c.bf16 %v687_v52, %v687_v52  ;;  %v679_v56 = vadd.f32 %v1400_v9, %v678_v54  ;;  %1217 = vmatprep.mubr.msk.bf16.mxu0 %vm813_vm2, %v697_v50 }
 0x1ca   : > { %v1200_v57 = vpop.f32.mrf.mxu1  ;;  %1218 = vmatmul.mubr.msk.bf16.gmra.mxu0 %vm813_vm2, %v698_v53 }
 0x1cb   : > { %772 = vst.msk [vmem:[%s1408_s15 + $0x38] sm:$0xf] %vm757_vm1, %v1127_v55  ;;  %v1125_v58 = vpack.c.bf16 %v679_v56, %v679_v56  ;;  %v690_v59 = vadd.f32 %v1200_v57, %v1400_v9 }
 0x1cc   : > { %v681_v60 = vpop.f32.mrf.mxu1 }
 0x1cd   : > { %770 = vst.msk [vmem:[%s1408_s15 + $0x30] sm:$0xf] %vm757_vm1, %v1125_v58  ;;  %v1128_v61 = vpack.c.bf16 %v690_v59, %v690_v59  ;;  %v682_v62 = vadd.f32 %v1400_v9, %v681_v60  ;;  %v700_v1 = vpack.c.bf16 %v690_v59, %v687_v52 }
 0x1cf   : > { %773 = vst.msk [vmem:[%s1408_s15 + $0x3c] sm:$0xf] %vm757_vm1, %v1128_v61  ;;  %v699_v63 = vpack.c.bf16 %v682_v62, %v679_v56  ;;  %v1126_v0 = vpack.c.bf16 %v682_v62, %v682_v62 }
 0x1d1   : > { %771 = vst.msk [vmem:[%s1408_s15 + $0x34] sm:$0xf] %vm757_vm1, %v1126_v0  ;;  %1221 = vmatprep.mubr.msk.bf16.mxu0 %vm813_vm2, %v699_v63 }
 0x1d2   : > { %1222 = vmatmul.mubr.msk.bf16.gmra.mxu0 %vm813_vm2, %v700_v1 }
 0x27a   : > { %v1211_v3 = vpop.f32.mrf.mxu0 }
 0x27b   : > { %v881_v4 = vadd.f32 %v1211_v3, %v1098_v2 }
 0x27c   : > { %v872_v5 = vpop.f32.mrf.mxu0 }
 0x27d   : > { %937 = vst [vmem:[%s1472_s20 + $0x10] sm:$0xff] %v881_v4  ;;  %v873_v6 = vadd.f32 %v1098_v2, %v872_v5 }
 0x27e   : > { %v1212_v7 = vpop.f32.mrf.mxu0 }
 0x27f   : > { %935 = vst [vmem:[%s1472_s20] sm:$0xff] %v873_v6  ;;  %v884_v8 = vadd.f32 %v1212_v7, %v1098_v2 }
 0x280   : > { %v875_v9 = vpop.f32.mrf.mxu0 }
 0x281   : > { %938 = vst [vmem:[%s1472_s20 + $0x18] sm:$0xff] %v884_v8  ;;  %v876_v10 = vadd.f32 %v1098_v2, %v875_v9 }
 0x282   : > { %v1215_v11 = vpop.f32.mrf.mxu0 }
 0x283   : > { %936 = vst [vmem:[%s1472_s20 + $0x8] sm:$0xff] %v876_v10  ;;  %v897_v12 = vadd.f32 %v1215_v11, %v1098_v2 }
 0x284   : > { %v888_v13 = vpop.f32.mrf.mxu0 }
 0x285   : > { %941 = vst [vmem:[%s1472_s20 + $0x30] sm:$0xff] %v897_v12  ;;  %v889_v14 = vadd.f32 %v1098_v2, %v888_v13 }
 0x286   : > { %v1216_v15 = vpop.f32.mrf.mxu0 }
 0x287   : > { %939 = vst [vmem:[%s1472_s20 + $0x20] sm:$0xff] %v889_v14  ;;  %v900_v16 = vadd.f32 %v1216_v15, %v1098_v2 }
 0x288   : > { %v891_v17 = vpop.f32.mrf.mxu0 }
 0x289   : > { %942 = vst [vmem:[%s1472_s20 + $0x38] sm:$0xff] %v900_v16  ;;  %v892_v18 = vadd.f32 %v1098_v2, %v891_v17 }
 0x28a   : > { %v1219_v19 = vpop.f32.mrf.mxu0 }
 0x28b   : > { %940 = vst [vmem:[%s1472_s20 + $0x28] sm:$0xff] %v892_v18  ;;  %v913_v20 = vadd.f32 %v1219_v19, %v1098_v2 }
 0x28c   : > { %v904_v21 = vpop.f32.mrf.mxu0 }
 0x28d   : > { %945 = vst [vmem:[%s1472_s20 + $0x50] sm:$0xff] %v913_v20  ;;  %v905_v22 = vadd.f32 %v1098_v2, %v904_v21 }
 0x28e   : > { %v1220_v23 = vpop.f32.mrf.mxu0 }
 0x28f   : > { %943 = vst [vmem:[%s1472_s20 + $0x40] sm:$0xff] %v905_v22  ;;  %v916_v24 = vadd.f32 %v1220_v23, %v1098_v2 }
 0x290   : > { %v907_v25 = vpop.f32.mrf.mxu0 }
 0x291   : > { %946 = vst [vmem:[%s1472_s20 + $0x58] sm:$0xff] %v916_v24  ;;  %v908_v26 = vadd.f32 %v1098_v2, %v907_v25 }
 0x292   : > { %v1223_v27 = vpop.f32.mrf.mxu0 }
 0x293   : > { %944 = vst [vmem:[%s1472_s20 + $0x48] sm:$0xff] %v908_v26  ;;  %v929_v28 = vadd.f32 %v1223_v27, %v1098_v2 }
 0x294   : > { %v920_v29 = vpop.f32.mrf.mxu0 }
 0x295   : > { %949 = vst [vmem:[%s1472_s20 + $0x70] sm:$0xff] %v929_v28  ;;  %v921_v30 = vadd.f32 %v1098_v2, %v920_v29 }
 0x296   : > { %v1224_v31 = vpop.f32.mrf.mxu0 }
 0x297   : > { %947 = vst [vmem:[%s1472_s20 + $0x60] sm:$0xff] %v921_v30  ;;  %v932_v32 = vadd.f32 %v1224_v31, %v1098_v2 }
 0x298   : > { %v923_v33 = vpop.f32.mrf.mxu0 }
 0x299   : > { %950 = vst [vmem:[%s1472_s20 + $0x78] sm:$0xff] %v932_v32  ;;  %v924_v34 = vadd.f32 %v1098_v2, %v923_v33 }
 0x29b   : > { %948 = vst [vmem:[%s1472_s20 + $0x68] sm:$0xff] %v924_v34 }
 0x29c PF: > { %s19_s27 = sadd.s32 1, %s1291_s27  }
 0x29d   : > { %p16_p4 = scmp.ge.s32.totalorder %s19_s27, 4  }
 0x29f   :  { %18 = sbr.rel (!%p16_p4) target bundleno = 1 (0x1), region = 90 }

// kernel: entity_relation_forward.3
= control target key start
LH: loop header
LB: loop body
LE: loop exit
PB: predicated region body
PF: predicated region fallthrough
CT: control target
= control target key end

     0   :  { %9 = vsyncpa [#allocation3], 0  ;;  %s1387_s15 = smov 0   ;;  %s1389_s16 = smov 0   ;;  %s1526_s0 = inlined_call_operand.vmem [shape: bf16[2,128,32], index: 0, kind: input, shape index: {}]   ;;  %s1527_s1 = inlined_call_operand.vmem [shape: bf16[2,32,128], index: 1, kind: input, shape index: {}]   ;;  %s1528_s2 = inlined_call_operand.vmem [shape: bf16[4,32,32], index: 2, kind: input, shape index: {}]   ;;  %s1529_s3 = inlined_call_operand.vmem [shape: f32[4], index: 3, kind: input, shape index: {}]   ;;  %s1530_s4 = inlined_call_operand.vmem [shape: bf16[2,4,128,128], index: 4, kind: output, shape index: {}]  }
   0x1   :  { %s1391_s17 = smov 0   ;;  %s1393_s18 = smov 0  }
   0x2   :  { %s1395_s19 = smov 0  }
   0x3 LB: > { %s971_s20 = sadd.s32 4294967295, %s1359_s19   ;;  %s30_s21 = sadd.s32 1, %s1351_s17  ;;  %s1359_s19 = sphi %s1395_s19, %s15_s19   ;;  %s1355_s18 = sphi %s1393_s18, %s1536_s18   ;;  %s1351_s17 = sphi %s1391_s17, %s1535_s17   ;;  %s1347_s16 = sphi %s1389_s16, %s1534_s16   ;;  %s1343_s15 = sphi %s1387_s15, %s1533_s15  }
   0x4   : > { %p32_p0 = scmp.ge.s32.totalorder %s30_s21, 2  ;;  %s34_s22 = sadd.s32 1, %s1355_s18 }
   0x5   : > { %p973_p1 = scmp.ge.s32.totalorder %s1359_s19, 1  ;;  %p170_p2 = scmp.lt.s32.totalorder %s1359_s19, 9 }
   0x6   : > { %s1538_s21 = smov (%p32_p0, %s30_s21), 0  ;;  %s1540_s22 = smov (!%p32_p0, %s34_s22), %s1355_s18 }
   0x7   : > { %p1420_p3 = pnand %p973_p1, %p170_p2  ;;  %p36_p4 = scmp.ge.s32.totalorder %s1540_s22, 4 }
   0x8   : > { %p1424_p5 = scmp.eq.s32.totalorder %s971_s20, 0  ;;  %s183_s27 = sshll.u32 %s1529_s3, 4  ;;  %s184_s27 = int_to_ptr.vmem [resolvable:$true] %s183_s27 }
   0x9   : > { %p1179_p6 = pneg %p1420_p3  ;;  %s1542_s22 = smov (%p36_p4, %s1540_s22), 0 }
   0xa   : > { %s1302_s28 = scalar_lea.vmem %s184_s27, 16  ;;  %p1310_p12 = scmp.lt.s32.totalorder %s184_s27, %s184_s27 }
   0xb   : > { %p1180_p7 = pnand %p1424_p5, %p1179_p6  ;;  %p1303_p8 = scmp.ne.s32.totalorder %s184_s27, %s1302_s28 }
   0xc   : > { %p1311_p13 = scmp.lt.s32.totalorder %s1302_s28, %s1302_s28 }
   0xd   : > { %p1304_p9 = pneg %p1180_p7 }
   0xe   : > { %p1312_p0 = por %p1311_p13, %p1310_p12 }
   0xf   : > { %p1305_p10 = pnand %p1304_p9, %p1303_p8 }
  0x11   : > { %p1306_p11 = pneg %p1305_p10 }
  0x13   : > { %p1313_p1 = pnand %p1312_p0, %p1306_p11 }
  0x15   : > { %1316 = shalt.err (!%p1313_p1)
}
  0x16   : > { %s1361_s29 = smov [#allocation2]   ;;  %225 = sbr.rel (%p1420_p3) target bundleno = 509 (0x1fd), region = 36 }
  0x17   : > { %1182 = dma.vmem_to_smem (!%p1180_p7), %s184_s27, 16, %s1361_s29, [#allocation3]  }
  0x1b   : > { %1338 = dma.done.wait (%p1424_p5), [#allocation3], 16  }
  0x1c   : > { %1340 = vsyncadd (%p1424_p5), [#allocation3], 4294967280 }
  0x1d   : > { %231 = sfence }
  0x1e   : > { %p275_p2 = scmp.lt.s32.totalorder %s1343_s15, 1  ;;  %p289_p4 = scmp.lt.s32.totalorder %s1347_s16, 3  ;;  %vm385_vm0 = vcmask 261120  }
  0x20   : > { %s1544_s15 = smov (!%p275_p2, %s1343_s15), 1 }
  0x21   : > { %s290_s30 = scalar_select %p289_p4, %s1347_s16, 3 }
  0x22   : > { %s1049_s5 = sshll.u32 %s1544_s15, 6  ;;  %s1050_s14 = sshll.u32 %s1544_s15, 4 }
  0x23   : > { %s282_s8 = scalar_lea.vmem %s1526_s0, %s1049_s5  ;;  %s1051_s9 = sshll.u32 %s290_s30, 4 }
  0x24   : > { %s293_s12 = scalar_lea.vmem %s1528_s2, %s1051_s9  ;;  %s1456_s13 = sadd.s32 %s1051_s9, %s1049_s5  ;;  %v1228_v0 = vld [vmem:[%s282_s8] sm:$0xff]   ;;  %v1229_v3 = vld [vmem:[%s282_s8 + $0x8] sm:$0xff]   ;;  %v1230_v4 = vld [vmem:[%s282_s8 + $0x10] sm:$0xff]  }
  0x25   : > { %v1226_v1 = vld [vmem:[%s293_s12 + $0x8] sm:$0xff]   ;;  %v1227_v2 = vld [vmem:[%s293_s12] sm:$0xff]   ;;  %1139 = vmatprep.mubr.msk.bf16.mxu0 %vm385_vm0, %v1228_v0  ;;  %v1231_v5 = vld [vmem:[%s282_s8 + $0x18] sm:$0xff]   ;;  %s288_s24 = scalar_lea.vmem %s1527_s1, %s1050_s14  ;;  %s515_s15 = sld [smem:[#allocation2 + %s1347_s16]] }
  0x26   : > { %1135 = vmatprep.subr.bf16.mxu0 %v1226_v1  ;;  %v1232_v6 = vld [vmem:[%s282_s8 + $0x20] sm:$0xff]   ;;  %v1233_v7 = vld [vmem:[%s282_s8 + $0x28] sm:$0xff]   ;;  %v1234_v8 = vld [vmem:[%s282_s8 + $0x30] sm:$0xff]   ;;  %s986_s16 = sshll.u32 %s1456_s13, 2 }
  0x27   : > { %1136 = vmatpush3.bf16.msra.mxu0 %v1226_v1  ;;  %v1235_v9 = vld [vmem:[%s282_s8 + $0x38] sm:$0xff]   ;;  %v1236_v10 = vld [vmem:[%s288_s24 + $0x8] sm:$0xff]   ;;  %v1237_v11 = vld [vmem:[%s288_s24] sm:$0xff]   ;;  %s1501_s27 = scalar_lea.vmem %s1530_s4, %s986_s16 }
  0x28   : > { %1137 = vmatprep.subr.bf16.mxu0 %v1227_v2  ;;  %1155 = vmatprep.subr.bf16.mxu1 %v1236_v10 }
  0x29   : > { %1156 = vmatpush3.bf16.msra.mxu1 %v1236_v10 }
  0x2a   : > { %1157 = vmatprep.subr.bf16.mxu1 %v1237_v11 }
  0x2b   : > { %1138 = vmatpush3.bf16.msra.mxu0 %v1227_v2  ;;  %v1479_v36 = vstv %s515_s15 }
  0x2d   : > { %1158 = vmatpush3.bf16.msra.mxu1 %v1237_v11 }
  0x2e   : > { %1140 = vmatmul.mubr.msk.bf16.vlgmr.msra.gmra.mxu0 %vm385_vm0, %v1229_v3 }
  0x2f   : > { %1143 = vmatprep.mubr.msk.bf16.mxu0 %vm385_vm0, %v1230_v4 }
  0x36   : > { %1144 = vmatmul.mubr.msk.bf16.gmra.mxu0 %vm385_vm0, %v1231_v5 }
  0x37   : > { %1147 = vmatprep.mubr.msk.bf16.mxu0 %vm385_vm0, %v1232_v6 }
  0x3e   : > { %1148 = vmatmul.mubr.msk.bf16.gmra.mxu0 %vm385_vm0, %v1233_v7 }
  0x3f   : > { %1151 = vmatprep.mubr.msk.bf16.mxu0 %vm385_vm0, %v1234_v8 }
  0x46   : > { %1152 = vmatmul.mubr.msk.bf16.gmra.mxu0 %vm385_vm0, %v1235_v9 }
  0xee   : > { %v1141_v12 = vpop.f32.mrf.mxu0 }
  0xf0   : > { %v444_v13 = vpop.f32.mrf.mxu0 }
  0xf2   : > { %v1142_v14 = vpop.f32.mrf.mxu0 }
  0xf3   : > { %v508_v17 = vpack.c.bf16 %v1142_v14, %v1141_v12 }
  0xf4   : > { %v447_v15 = vpop.f32.mrf.mxu0 }
  0xf5   : > { %v507_v16 = vpack.c.bf16 %v447_v15, %v444_v13 }
  0xf6   : > { %v1145_v18 = vpop.f32.mrf.mxu0 }
  0xf7   : > { %1159 = vmatprep.mubr.msk.bf16.mxu1 %vm385_vm0, %v507_v16 }
  0xf8   : > { %v460_v19 = vpop.f32.mrf.mxu0  ;;  %1160 = vmatmul.mubr.msk.bf16.vlgmr.msra.gmra.mxu1 %vm385_vm0, %v508_v17 }
  0xfa   : > { %v1146_v20 = vpop.f32.mrf.mxu0 }
  0xfb   : > { %v510_v23 = vpack.c.bf16 %v1146_v20, %v1145_v18 }
  0xfc   : > { %v463_v21 = vpop.f32.mrf.mxu0 }
  0xfd   : > { %v509_v22 = vpack.c.bf16 %v463_v21, %v460_v19 }
  0xfe   : > { %v1149_v24 = vpop.f32.mrf.mxu0 }
  0xff   : > { %1163 = vmatprep.mubr.msk.bf16.mxu1 %vm385_vm0, %v509_v22 }
 0x100   : > { %v476_v25 = vpop.f32.mrf.mxu0  ;;  %1164 = vmatmul.mubr.msk.bf16.gmra.mxu1 %vm385_vm0, %v510_v23 }
 0x102   : > { %v1150_v26 = vpop.f32.mrf.mxu0 }
 0x103   : > { %v512_v29 = vpack.c.bf16 %v1150_v26, %v1149_v24 }
 0x104   : > { %v479_v27 = vpop.f32.mrf.mxu0 }
 0x105   : > { %v511_v28 = vpack.c.bf16 %v479_v27, %v476_v25 }
 0x106   : > { %v1153_v30 = vpop.f32.mrf.mxu0 }
 0x107   : > { %1167 = vmatprep.mubr.msk.bf16.mxu1 %vm385_vm0, %v511_v28 }
 0x108   : > { %v492_v31 = vpop.f32.mrf.mxu0  ;;  %1168 = vmatmul.mubr.msk.bf16.gmra.mxu1 %vm385_vm0, %v512_v29 }
 0x10a   : > { %v1154_v32 = vpop.f32.mrf.mxu0 }
 0x10b   : > { %v514_v35 = vpack.c.bf16 %v1154_v32, %v1153_v30 }
 0x10c   : > { %v495_v33 = vpop.f32.mrf.mxu0 }
 0x10d   : > { %v513_v34 = vpack.c.bf16 %v495_v33, %v492_v31 }
 0x10f   : > { %1171 = vmatprep.mubr.msk.bf16.mxu1 %vm385_vm0, %v513_v34 }
 0x110   : > { %1172 = vmatmul.mubr.msk.bf16.gmra.mxu1 %vm385_vm0, %v514_v35 }
 0x1b8   : > { %v1161_v37 = vpop.f32.mrf.mxu1 }
 0x1b9   : > { %v596_v38 = vadd.f32 %v1161_v37, %v1479_v36 }
 0x1ba   : > { %v587_v39 = vpop.f32.mrf.mxu1 }
 0x1bb   : > { %v1017_v40 = vmul.f32 -1.442695, %v596_v38  ;;  %v588_v41 = vadd.f32 %v587_v39, %v1479_v36 }
 0x1bc   : > { %v1162_v42 = vpop.f32.mrf.mxu1 }
 0x1bd   : > { %1238 = vpow2.f32 %v1017_v40  ;;  %v1015_v43 = vmul.f32 -1.442695, %v588_v41  ;;  %v599_v44 = vadd.f32 %v1162_v42, %v1479_v36 }
 0x1be   : > { %v590_v45 = vpop.f32.mrf.mxu1 }
 0x1bf   : > { %1240 = vpow2.f32 %v1015_v43  ;;  %v1018_v46 = vmul.f32 -1.442695, %v599_v44  ;;  %v591_v47 = vadd.f32 %v590_v45, %v1479_v36 }
 0x1c0   : > { %v1165_v48 = vpop.f32.mrf.mxu1 }
 0x1c1   : > { %1242 = vpow2.f32 %v1018_v46  ;;  %v1016_v49 = vmul.f32 -1.442695, %v591_v47  ;;  %v612_v50 = vadd.f32 %v1165_v48, %v1479_v36 }
 0x1c2   : > { %v603_v51 = vpop.f32.mrf.mxu1 }
 0x1c3   : > { %1244 = vpow2.f32 %v1016_v49  ;;  %v1021_v52 = vmul.f32 -1.442695, %v612_v50  ;;  %v604_v53 = vadd.f32 %v603_v51, %v1479_v36 }
 0x1c4   : > { %v1166_v54 = vpop.f32.mrf.mxu1 }
 0x1c5   : > { %1246 = vpow2.f32 %v1021_v52  ;;  %v1019_v55 = vmul.f32 -1.442695, %v604_v53  ;;  %v615_v56 = vadd.f32 %v1166_v54, %v1479_v36 }
 0x1c6   : > { %v606_v57 = vpop.f32.mrf.mxu1 }
 0x1c7   : > { %1248 = vpow2.f32 %v1019_v55  ;;  %v1022_v58 = vmul.f32 -1.442695, %v615_v56  ;;  %v607_v59 = vadd.f32 %v606_v57, %v1479_v36 }
 0x1c8   : > { %v1169_v60 = vpop.f32.mrf.mxu1 }
 0x1c9   : > { %1250 = vpow2.f32 %v1022_v58  ;;  %v1020_v61 = vmul.f32 -1.442695, %v607_v59  ;;  %v628_v62 = vadd.f32 %v1169_v60, %v1479_v36 }
 0x1ca   : > { %v1239_v63 = vpop.eup %1238  ;;  %v619_v0 = vpop.f32.mrf.mxu1 }
 0x1cb   : > { %v700_v1 = vadd.f32 1.0, %v1239_v63  ;;  %1252 = vpow2.f32 %v1020_v61  ;;  %v1025_v2 = vmul.f32 -1.442695, %v628_v62  ;;  %v620_v3 = vadd.f32 %v619_v0, %v1479_v36 }
 0x1cc   : > { %v1241_v4 = vpop.eup %1240  ;;  %v1170_v5 = vpop.f32.mrf.mxu1 }
 0x1cd   : > { %1254 = vrcp.f32 %v700_v1  ;;  %v698_v6 = vadd.f32 1.0, %v1241_v4  ;;  %v1023_v7 = vmul.f32 -1.442695, %v620_v3  ;;  %v631_v8 = vadd.f32 %v1170_v5, %v1479_v36 }
 0x1ce   : > { %v1243_v9 = vpop.eup %1242  ;;  %1256 = vpow2.f32 %v1025_v2  ;;  %v622_v10 = vpop.f32.mrf.mxu1 }
 0x1cf   : > { %1258 = vrcp.f32 %v698_v6  ;;  %v701_v11 = vadd.f32 1.0, %v1243_v9  ;;  %v1026_v12 = vmul.f32 -1.442695, %v631_v8  ;;  %v623_v13 = vadd.f32 %v622_v10, %v1479_v36 }
 0x1d0   : > { %v1245_v14 = vpop.eup %1244  ;;  %1260 = vpow2.f32 %v1023_v7  ;;  %v1173_v15 = vpop.f32.mrf.mxu1 }
 0x1d1   : > { %1262 = vrcp.f32 %v701_v11  ;;  %v699_v16 = vadd.f32 1.0, %v1245_v14  ;;  %v1024_v17 = vmul.f32 -1.442695, %v623_v13  ;;  %v644_v18 = vadd.f32 %v1173_v15, %v1479_v36 }
 0x1d2   : > { %v1247_v19 = vpop.eup %1246  ;;  %1264 = vpow2.f32 %v1026_v12  ;;  %v635_v20 = vpop.f32.mrf.mxu1 }
 0x1d3   : > { %1266 = vrcp.f32 %v699_v16  ;;  %v704_v21 = vadd.f32 1.0, %v1247_v19  ;;  %v1029_v22 = vmul.f32 -1.442695, %v644_v18  ;;  %v636_v23 = vadd.f32 %v635_v20, %v1479_v36 }
 0x1d4   : > { %v1249_v24 = vpop.eup %1248  ;;  %1268 = vpow2.f32 %v1024_v17  ;;  %v1174_v25 = vpop.f32.mrf.mxu1 }
 0x1d5   : > { %1270 = vrcp.f32 %v704_v21  ;;  %v702_v26 = vadd.f32 1.0, %v1249_v24  ;;  %v1027_v27 = vmul.f32 -1.442695, %v636_v23  ;;  %v647_v28 = vadd.f32 %v1174_v25, %v1479_v36 }
 0x1d6   : > { %v1251_v29 = vpop.eup %1250  ;;  %1272 = vpow2.f32 %v1029_v22  ;;  %v638_v30 = vpop.f32.mrf.mxu1 }
 0x1d7   : > { %1274 = vrcp.f32 %v702_v26  ;;  %v705_v31 = vadd.f32 1.0, %v1251_v29  ;;  %v1030_v32 = vmul.f32 -1.442695, %v647_v28  ;;  %v639_v33 = vadd.f32 %v638_v30, %v1479_v36 }
 0x1d8   : > { %v1253_v34 = vpop.eup %1252  ;;  %1276 = vpow2.f32 %v1027_v27 }
 0x1d9   : > { %1278 = vrcp.f32 %v705_v31  ;;  %v703_v35 = vadd.f32 1.0, %v1253_v34  ;;  %v1028_v37 = vmul.f32 -1.442695, %v639_v33 }
 0x1da   : > { %v1255_v38 = vpop.eup %1254  ;;  %1280 = vpow2.f32 %v1030_v32 }
 0x1db   : > { %v1257_v39 = vpop.eup %1256  ;;  %1282 = vrcp.f32 %v703_v35 }
 0x1dc   : > { %v1259_v40 = vpop.eup %1258  ;;  %1284 = vpow2.f32 %v1028_v37  ;;  %v708_v42 = vadd.f32 1.0, %v1257_v39 }
 0x1dd   : > { %v1261_v41 = vpop.eup %1260 }
 0x1de   : > { %v1263_v43 = vpop.eup %1262  ;;  %v706_v45 = vadd.f32 1.0, %v1261_v41  ;;  %1286 = vrcp.f32 %v708_v42 }
 0x1df   : > { %v1265_v36 = vpop.eup %1264  ;;  %v1076_v44 = vpack.c.bf16 %v1263_v43, %v1255_v38 }
 0x1e0   : > { %v1267_v46 = vpop.eup %1266  ;;  %v709_v47 = vadd.f32 1.0, %v1265_v36 }
 0x1e1   : > { %v1269_v48 = vpop.eup %1268  ;;  %1108 = vst [vmem:[%s1501_s27 + $0x8] sm:$0xff] %v1076_v44   ;;  %v1071_v49 = vpack.c.bf16 %v1267_v46, %v1259_v40 }
 0x1e2   : > { %v1271_v50 = vpop.eup %1270  ;;  %1288 = vrcp.f32 %v709_v47  ;;  %v707_v51 = vadd.f32 1.0, %v1269_v48 }
 0x1e3   : > { %v1273_v52 = vpop.eup %1272  ;;  %1072 = vst [vmem:[%s1501_s27] sm:$0xff] %v1071_v49   ;;  %1290 = vrcp.f32 %v706_v45 }
 0x1e4   : > { %v1275_v53 = vpop.eup %1274  ;;  %1292 = vrcp.f32 %v707_v51  ;;  %v712_v55 = vadd.f32 1.0, %v1273_v52 }
 0x1e5   : > { %v1277_v54 = vpop.eup %1276 }
 0x1e6   : > { %v1279_v56 = vpop.eup %1278  ;;  %v710_v59 = vadd.f32 1.0, %v1277_v54  ;;  %1294 = vrcp.f32 %v712_v55 }
 0x1e7   : > { %v1281_v57 = vpop.eup %1280  ;;  %v1086_v58 = vpack.c.bf16 %v1279_v56, %v1271_v50 }
 0x1e8   : > { %v1283_v60 = vpop.eup %1282  ;;  %v713_v61 = vadd.f32 1.0, %v1281_v57 }
 0x1e9   : > { %v1285_v62 = vpop.eup %1284  ;;  %1110 = vst [vmem:[%s1501_s27 + $0x18] sm:$0xff] %v1086_v58   ;;  %v1081_v63 = vpack.c.bf16 %v1283_v60, %v1275_v53 }
 0x1ea   : > { %1296 = vrcp.f32 %v713_v61  ;;  %v711_v0 = vadd.f32 1.0, %v1285_v62 }
 0x1eb   : > { %1109 = vst [vmem:[%s1501_s27 + $0x10] sm:$0xff] %v1081_v63   ;;  %1298 = vrcp.f32 %v710_v59  ;;  %v1287_v1 = vpop.eup %1286 }
 0x1ec   : > { %1300 = vrcp.f32 %v711_v0 }
 0x1ef   : > { %v1289_v2 = vpop.eup %1288 }
 0x1f0   : > { %v1291_v3 = vpop.eup %1290  ;;  %v1096_v4 = vpack.c.bf16 %v1289_v2, %v1287_v1 }
 0x1f1   : > { %v1293_v5 = vpop.eup %1292 }
 0x1f2   : > { %1112 = vst [vmem:[%s1501_s27 + $0x28] sm:$0xff] %v1096_v4   ;;  %v1091_v6 = vpack.c.bf16 %v1293_v5, %v1291_v3 }
 0x1f3   : > { %v1295_v7 = vpop.eup %1294 }
 0x1f4   : > { %1111 = vst [vmem:[%s1501_s27 + $0x20] sm:$0xff] %v1091_v6  }
 0x1f7   : > { %v1297_v8 = vpop.eup %1296 }
 0x1f8   : > { %v1299_v9 = vpop.eup %1298  ;;  %v1106_v10 = vpack.c.bf16 %v1297_v8, %v1295_v7 }
 0x1f9   : > { %v1301_v11 = vpop.eup %1300 }
 0x1fa   : > { %1114 = vst [vmem:[%s1501_s27 + $0x38] sm:$0xff] %v1106_v10   ;;  %v1101_v12 = vpack.c.bf16 %v1301_v11, %v1299_v9 }
 0x1fc   : > { %1113 = vst [vmem:[%s1501_s27 + $0x30] sm:$0xff] %v1101_v12  }
 0x1fd PF: > { %s15_s19 = sadd.s32 1, %s1359_s19   ;;  %s1533_s15 = smov %s1351_s17 }
 0x1fe   : > { %p12_p3 = scmp.ge.s32.totalorder %s15_s19, 10   ;;  %s1534_s16 = smov %s1355_s18 }
 0x1ff   : > { %s1535_s17 = smov %s1538_s21  ;;  %s1536_s18 = smov %s1542_s22 }
 0x200   :  { %14 = sbr.rel (!%p12_p3) target bundleno = 3 (0x3), region = 77 }
 0x205   :  { %864 = vsyncpa [#allocation3], 1 }
 0x206   :  { %866 = vsyncpa [#allocation3 + $0x1], 1 }

</bundles_post_ra>
